<compile_context>
chip_gen: v7x
topology: tpu7x:2x2x1
jax: 0.10.0
libtpu: 0.0.40
codegen_flags: <defaults>
</compile_context>

<pallas_src>
import jax
import jax.numpy as jnp
from jax.experimental import pallas as pl
from jax.experimental.pallas import tpu as pltpu


def duration_nn_kernel(x_ref, w1a_ref, w2a_ref, w3_ref, b3_ref, o_ref):
    hp = jax.lax.Precision.HIGHEST

    # x_ref : (8, TILE_B)  rows 0..3 = features, row 4 = ones, rows 5..7 = 0
    # w1a   : (65, 8)      rows 0..63 = [w1 | b1 | 0 0 0], row 64 selects the ones row
    # fc1 + b1 + ReLU, all on the MXU; row 64 of h1 stays == 1 through ReLU.
    h1 = jnp.maximum(
        jnp.dot(w1a_ref[...], x_ref[...],
                preferred_element_type=jnp.float32, precision=hp),
        0.0)                                                   # (65, TILE_B)

    # fc2 + b2 + ReLU on the MXU (w2a = [w2 | b2], bias picked up via the ones row).
    h2 = jnp.maximum(
        jnp.dot(w2a_ref[...], h1,
                preferred_element_type=jnp.float32, precision=hp),
        0.0)                                                   # (32, TILE_B)

    # fc3 head: width-1 output == 32-wide reduction -> VPU mul + XLU sublane sum.
    # b3 comes from SMEM as a scalar splat (no lane broadcast).
    out = jnp.sum(w3_ref[...] * h2, axis=0, keepdims=True) + b3_ref[0, 0]  # (1, TILE_B)
    o_ref[...] = out.astype(o_ref.dtype)


def _round_up(n, m):
    return ((n + m - 1) // m) * m


def duration_nn(x, params, *, tile_b=32768):
    """x: (B, in_features) float32 -> (B, 1) float32 (same semantics as DurationNN)."""
    w1, b1, w2, b2, w3, b3 = params
    B, F = x.shape
    H1 = w1.shape[0]          # 64
    H2 = w2.shape[0]          # 32
    FA = 8                    # augmented feature rows: F features + ones row + pad
    assert F + 1 <= FA

    # ---- tile selection: lane-aligned, VMEM-safe, >=2 parallel tiles when possible.
    b128 = _round_up(B, 128)
    tb = min(int(tile_b), b128, 65536)      # 65536 cols ~= 4.7 MiB of 2x-buffered tiles
    tb = max(128, (tb // 128) * 128)        # multiple of 128 -> unmasked lane-dense vst
    if b128 >= 256 and b128 // tb < 2:      # keep both v7x TensorCores busy
        tb = _round_up(-(-b128 // 2), 128)
    b_pad = _round_up(B, tb)

    # ---- augmented input slab: batch on lanes, ones row for the fused biases.
    # TODO(synk): a producer that can emit x already as an (8, B) slab (features on
    # sublanes, ones row included) would skip this extra transpose/pad dispatch.
    x_aug = jnp.zeros((FA, b_pad), jnp.float32)
    x_aug = x_aug.at[:F, :B].set(x.T)
    x_aug = x_aug.at[F, :].set(1.0)

    # ---- fused weights.
    w1a = jnp.zeros((H1 + 1, FA), jnp.float32)
    w1a = w1a.at[:H1, :F].set(w1)
    w1a = w1a.at[:H1, F].set(b1[:, 0])
    w1a = w1a.at[H1, F].set(1.0)            # h1 row H1 == relu(1) == 1
    w2a = jnp.concatenate([w2, b2], axis=1)  # (32, 65)
    w3_col = w3.T                            # (32, 1)
    b3_s = b3.reshape(1, 1)

    vmem = pltpu.MemorySpace.VMEM
    smem = pltpu.MemorySpace.SMEM
    const = lambda i: (0, 0)                 # weights stay VMEM-resident

    out_t = pl.pallas_call(
        duration_nn_kernel,
        out_shape=jax.ShapeDtypeStruct((1, b_pad), jnp.float32),
        grid=(b_pad // tb,),
        in_specs=[
            pl.BlockSpec((FA, tb), lambda i: (0, i), memory_space=vmem),   # x tile
            pl.BlockSpec(w1a.shape, const, memory_space=vmem),
            pl.BlockSpec(w2a.shape, const, memory_space=vmem),
            pl.BlockSpec(w3_col.shape, const, memory_space=vmem),
            pl.BlockSpec((1, 1), const, memory_space=smem),                # b3 scalar
        ],
        out_specs=pl.BlockSpec((1, tb), lambda i: (0, i), memory_space=vmem),
        compiler_params=pltpu.CompilerParams(
            dimension_semantics=("parallel",),   # batch tiles independent (megacore)
        ),
    )(x_aug, w1a, w2a, w3_col, b3_s)

    # Back to the PyTorch (B, 1) convention, dropping the lane padding.
    return out_t[0, :B][:, None]


def duration_nn_reference(x, params):
    """Pure-JAX reference with identical math (fp32, highest precision)."""
    w1, b1, w2, b2, w3, b3 = params
    hp = jax.lax.Precision.HIGHEST
    h = jnp.maximum(jnp.dot(x, w1.T, precision=hp) + b1[:, 0], 0.0)
    h = jnp.maximum(jnp.dot(h, w2.T, precision=hp) + b2[:, 0], 0.0)
    return jnp.dot(h, w3.T, precision=hp) + b3[:, 0]


def init_params(key, input_size):
    """nn.Linear-style init; weights in PyTorch (out, in) layout, biases as (out, 1)."""
    ks = jax.random.split(key, 6)

    def linear(kw, kb, fan_in, fan_out):
        bound = 1.0 / jnp.sqrt(fan_in)
        w = jax.random.uniform(kw, (fan_out, fan_in), jnp.float32, -bound, bound)
        b = jax.random.uniform(kb, (fan_out, 1), jnp.float32, -bound, bound)
        return w, b

    w1, b1 = linear(ks[0], ks[1], input_size, 64)
    w2, b2 = linear(ks[2], ks[3], 64, 32)
    w3, b3 = linear(ks[4], ks[5], 32, 1)
    return (w1, b1, w2, b2, w3, b3)


if __name__ == "__main__":
    key = jax.random.PRNGKey(0)
    k_params, k_x1, k_x2 = jax.random.split(key, 3)

    input_size = 4   # ['day_of_week', 'is_weekend', 'hour', 'minute']
    params = init_params(k_params, input_size)

    # Small batch matching the spec's usage (single 128-lane tile, grid=(1,)).
    x_small = jax.random.normal(k_x1, (8, input_size), jnp.float32)
    out_small = jax.block_until_ready(duration_nn(x_small, params))
    ref_small = duration_nn_reference(x_small, params)
    assert out_small.shape == (8, 1)
    assert jnp.allclose(out_small, ref_small, atol=1e-4, rtol=1e-4), "mismatch (B=8)"

    # Multi-tile grid path (3 parallel tiles of 128 lanes) to exercise pipelining,
    # padding, and the megacore-sharded grid.
    x_big = jax.random.normal(k_x2, (384, input_size), jnp.float32)
    out_big = jax.block_until_ready(duration_nn(x_big, params, tile_b=128))
    ref_big = duration_nn_reference(x_big, params)
    assert out_big.shape == (384, 1)
    assert jnp.allclose(out_big, ref_big, atol=1e-4, rtol=1e-4), "mismatch (B=384)"

    print("KERNEL_OK")
</pallas_src>

<mosaic_0001>
module attributes {stable_mosaic.version = 11 : i64} {
  func.func @duration_nn_kernel(%arg0: i32, %arg1: memref<8x128xf32, #tpu.memory_space<vmem>>, %arg2: memref<65x8xf32, #tpu.memory_space<vmem>>, %arg3: memref<32x65xf32, #tpu.memory_space<vmem>>, %arg4: memref<32x1xf32, #tpu.memory_space<vmem>>, %arg5: memref<1x1xf32, #tpu.memory_space<smem>>, %arg6: memref<1x128xf32, #tpu.memory_space<vmem>>) attributes {dimension_semantics = [#tpu.dimension_semantics<parallel>], iteration_bounds = array<i64: 1>, scalar_prefetch = 0 : i64, scratch_operands = 0 : i64, tpu.core_type = #tpu.core_type<tc>, window_params = [{transform_indices = @transform_0, window_bounds = array<i64: 8, 128>}, {pipeline_mode = #tpu.pipeline_mode<synchronous>, transform_indices = @transform_1, window_bounds = array<i64: 65, 8>}, {pipeline_mode = #tpu.pipeline_mode<synchronous>, transform_indices = @transform_2, window_bounds = array<i64: 32, 65>}, {pipeline_mode = #tpu.pipeline_mode<synchronous>, transform_indices = @transform_3, window_bounds = array<i64: 32, 1>}, {transform_indices = @transform_4, window_bounds = array<i64: 1, 1>}, {transform_indices = @transform_5, window_bounds = array<i64: 1, 128>}]} {
    %c0 = arith.constant 0 : index
    %c0_0 = arith.constant 0 : index
    %0 = vector.load %arg2[%c0, %c0_0] : memref<65x8xf32, #tpu.memory_space<vmem>>, vector<65x8xf32>
    %c0_1 = arith.constant 0 : index
    %c0_2 = arith.constant 0 : index
    %1 = vector.load %arg1[%c0_1, %c0_2] : memref<8x128xf32, #tpu.memory_space<vmem>>, vector<8x128xf32>
    %cst = arith.constant dense<0.000000e+00> : vector<65x128xf32>
    %2 = tpu.matmul %0, %1, %cst {dimension_numbers = #tpu.dot_dimension_numbers<[1], [0], [0], [1], [0, 0, 1, 1], [], []>, precision = #tpu.contract_precision<fp32>} : vector<65x8xf32>, vector<8x128xf32>, vector<65x128xf32> -> vector<65x128xf32>
    %cst_3 = arith.constant 0.000000e+00 : f32
    %3 = vector.broadcast %cst_3 : f32 to vector<65x128xf32>
    %4 = arith.maximumf %2, %3 : vector<65x128xf32>
    %c0_4 = arith.constant 0 : index
    %c0_5 = arith.constant 0 : index
    %5 = vector.load %arg3[%c0_4, %c0_5] : memref<32x65xf32, #tpu.memory_space<vmem>>, vector<32x65xf32>
    %cst_6 = arith.constant dense<0.000000e+00> : vector<32x128xf32>
    %6 = tpu.matmul %5, %4, %cst_6 {dimension_numbers = #tpu.dot_dimension_numbers<[1], [0], [0], [1], [0, 0, 1, 1], [], []>, precision = #tpu.contract_precision<fp32>} : vector<32x65xf32>, vector<65x128xf32>, vector<32x128xf32> -> vector<32x128xf32>
    %cst_7 = arith.constant 0.000000e+00 : f32
    %7 = vector.broadcast %cst_7 : f32 to vector<32x128xf32>
    %8 = arith.maximumf %6, %7 : vector<32x128xf32>
    %c0_8 = arith.constant 0 : index
    %c0_9 = arith.constant 0 : index
    %9 = vector.load %arg4[%c0_8, %c0_9] : memref<32x1xf32, #tpu.memory_space<vmem>>, vector<32x1xf32>
    %10 = vector.broadcast %9 : vector<32x1xf32> to vector<32x128xf32>
    %11 = arith.mulf %10, %8 : vector<32x128xf32>
    %cst_10 = arith.constant dense<0.000000e+00> : vector<128xf32>
    %12 = vector.multi_reduction <add>, %11, %cst_10 [0] : vector<32x128xf32> to vector<128xf32>
    %13 = vector.shape_cast %12 : vector<128xf32> to vector<1x128xf32>
    %c0_11 = arith.constant 0 : index
    %c0_12 = arith.constant 0 : index
    %14 = memref.load %arg5[%c0_11, %c0_12] : memref<1x1xf32, #tpu.memory_space<smem>>
    %15 = vector.broadcast %14 : f32 to vector<1x128xf32>
    %16 = arith.addf %13, %15 : vector<1x128xf32>
    %c0_13 = arith.constant 0 : index
    %c0_14 = arith.constant 0 : index
    %17 = vector.load %arg6[%c0_13, %c0_14] : memref<1x128xf32, #tpu.memory_space<vmem>>, vector<1x128xf32>
    tpu.vector_store %arg6[%c0_13, %c0_14], %16 {strides = array<i32>} : memref<1x128xf32, #tpu.memory_space<vmem>>, vector<1x128xf32>,
    return
  }
  func.func @transform_0(%arg0: i32) -> (i32, i32) {
    %c0_i32 = arith.constant 0 : i32
    %c0_i32_0 = arith.constant 0 : i32
    return %c0_i32, %arg0 : i32, i32
  }
  func.func @transform_1(%arg0: i32) -> (i32, i32) {
    %c0_i32 = arith.constant 0 : i32
    %c0_i32_0 = arith.constant 0 : i32
    %c0_i32_1 = arith.constant 0 : i32
    return %c0_i32, %c0_i32_0 : i32, i32
  }
  func.func @transform_2(%arg0: i32) -> (i32, i32) {
    %c0_i32 = arith.constant 0 : i32
    %c0_i32_0 = arith.constant 0 : i32
    %c0_i32_1 = arith.constant 0 : i32
    return %c0_i32, %c0_i32_0 : i32, i32
  }
  func.func @transform_3(%arg0: i32) -> (i32, i32) {
    %c0_i32 = arith.constant 0 : i32
    %c0_i32_0 = arith.constant 0 : i32
    %c0_i32_1 = arith.constant 0 : i32
    return %c0_i32, %c0_i32_0 : i32, i32
  }
  func.func @transform_4(%arg0: i32) -> (i32, i32) {
    %c0_i32 = arith.constant 0 : i32
    %c0_i32_0 = arith.constant 0 : i32
    %c0_i32_1 = arith.constant 0 : i32
    return %c0_i32, %c0_i32_0 : i32, i32
  }
  func.func @transform_5(%arg0: i32) -> (i32, i32) {
    %c0_i32 = arith.constant 0 : i32
    %c0_i32_0 = arith.constant 0 : i32
    return %c0_i32, %arg0 : i32, i32
  }
}

</mosaic_0001>

<bundles_post_ra>
// kernel: tpu_custom_call.1
= control target key start
LH: loop header
LB: loop body
LE: loop exit
PB: predicated region body
PF: predicated region fallthrough
CT: control target
= control target key end

     0   :  { %vm32_vm0 = vcmask 64512   ;;  %v2303_v3 = vmov 0.0   ;;  %vm2304_vm1 = vmmov 0   ;;  %s2816_s0 = inlined_call_operand.vmem [shape: f32[8,128], index: 0, kind: input, shape index: {}]   ;;  %s2817_s1 = inlined_call_operand.vmem [shape: f32[65,8], index: 1, kind: input, shape index: {}]   ;;  %s2818_s2 = inlined_call_operand.vmem [shape: f32[32,65], index: 2, kind: input, shape index: {}]   ;;  %s2819_s3 = inlined_call_operand.vmem [shape: f32[32,1], index: 3, kind: input, shape index: {}]   ;;  %s2820_s4 = inlined_call_operand.<no memory space> [shape: f32[1,1], index: 4, kind: input, shape index: {}]   ;;  %s2821_s5 = inlined_call_operand.hbm [shape: f32[1,128], index: 5, kind: output, shape index: {}]  }
   0x1   :  { %v31_v0 = vld [vmem:[%s2816_s0] sm:$0xff]  ;;  %v23_v2 = vld [vmem:[%s2817_s1 + $0x8] sm:$0xff]  ;;  %1785 = vmatprep.subr.mxu0 %v2303_v3  ;;  %1787 = vmatprep.mubr.msk.f32.mxu0 %vm2304_vm1, %v2303_v3  ;;  %v24_v7 = vld [vmem:[%s2817_s1 + $0x10] sm:$0xff] }
   0x2   :  { %v22_v1 = vld [vmem:[%s2817_s1] sm:$0xff]  ;;  %v2347_v4 = vand.u32 4294901760, %v31_v0  ;;  %v37_v6 = vsel %vm32_vm0, %v23_v2, 0  ;;  %1756 = vmatprep.subr.mxu1 %v2303_v3  ;;  %1758 = vmatprep.mubr.msk.f32.mxu1 %vm2304_vm1, %v2303_v3 }
   0x3   :  { %v34_v5 = vsel %vm32_vm0, %v22_v1, 0 }
   0x4   :  { %v2360_v8 = vsub.f32 %v31_v0, %v2347_v4  ;;  %1757 = vmatpush3.msra.mxu1 %v2347_v4  ;;  %v2363_v9 = vand.u32 4294901760, %v34_v5 }
   0x5   :  { %2170 = vmatprep.subr.mxu1 %v2303_v3 }
   0x6   :  { %11 = vsyncpa [#allocation4], 0  ;;  %v219_v10 = vand.u32 4294901760, %v2360_v8  ;;  %v2367_v11 = vand.u32 4294901760, %v37_v6  ;;  %v40_v12 = vsel %vm32_vm0, %v24_v7, 0  ;;  %v2371_v13 = vsub.f32 %v34_v5, %v2363_v9  ;;  %v25_v14 = vld [vmem:[%s2817_s1 + $0x18] sm:$0xff] }
   0x7   :  { %v2382_v17 = vand.u32 4294901760, %v40_v12  ;;  %v26_v18 = vld [vmem:[%s2817_s1 + $0x20] sm:$0xff]  ;;  %v43_v21 = vsel %vm32_vm0, %v25_v14, 0  ;;  %v27_v28 = vld [vmem:[%s2817_s1 + $0x28] sm:$0xff]  ;;  %v28_v36 = vld [vmem:[%s2817_s1 + $0x30] sm:$0xff]  ;;  %vm863_vm2 = vcmask 531456  }
   0x8   :  { %v220_v15 = vsub.f32 %v2360_v8, %v219_v10  ;;  %v2380_v16 = vsub.f32 %v37_v6, %v2367_v11  ;;  %v128_v19 = vand.u32 4294901760, %v2371_v13  ;;  %v46_v25 = vsel %vm32_vm0, %v26_v18, 0  ;;  %v29_v43 = vld [vmem:[%s2817_s1 + $0x38] sm:$0xff]  ;;  %v30_v50 = vld [vmem:[%s2817_s1 + $0x40] sm:$0x1]  ;;  %s2306_s26 = smov [#allocation3]  }
   0x9   :  { %v2391_v23 = vsub.f32 %v40_v12, %v2382_v17  ;;  %v2402_v27 = vand.u32 4294901760, %v43_v21  ;;  %v2415_v32 = vand.u32 4294901760, %v46_v25  ;;  %v49_v35 = vsel %vm32_vm0, %v27_v28, 0  ;;  %s1610_s27 = sshll.u32 %s2306_s26, 4  ;;  %s1611_s27 = int_to_ptr.vmem [resolvable:$true] %s1610_s27 }
   0xa   :  { %v221_v20 = vand.u32 4294901760, %v220_v15  ;;  %v138_v22 = vand.u32 4294901760, %v2380_v16  ;;  %v129_v24 = vsub.f32 %v2371_v13, %v128_v19  ;;  %v2433_v39 = vand.u32 4294901760, %v49_v35  ;;  %v859_v15 = vld [vmem:[%s2818_s2] sm:$0xff]  ;;  %s2279_s28 = scalar_lea.vmem %s1611_s27, 16  ;;  %s2283_s29 = scalar_lea.vmem %s1611_s27, 32 }
   0xb   :  { %v148_v29 = vand.u32 4294901760, %v2391_v23  ;;  %v2413_v31 = vsub.f32 %v43_v21, %v2402_v27  ;;  %v2431_v38 = vsub.f32 %v46_v25, %v2415_v32  ;;  %v52_v42 = vsel %vm32_vm0, %v28_v36, 0  ;;  %p2280_p0 = scmp.ne.s32.totalorder %s1611_s27, %s2279_s28  ;;  %p2284_p1 = scmp.lt.s32.totalorder %s1611_s27, %s1611_s27 }
   0xc   :  { %1786 = vmatpush3.msra.mxu0 %v221_v20  ;;  %v139_v26 = vsub.f32 %v2380_v16, %v138_v22  ;;  %v130_v30 = vand.u32 4294901760, %v129_v24  ;;  %v2449_v45 = vsub.f32 %v49_v35, %v2433_v39  ;;  %v2451_v46 = vand.u32 4294901760, %v52_v42  ;;  %p2285_p2 = scmp.lt.s32.totalorder %s2283_s29, %s2279_s28 }
   0xd   :  { %1788 = vmatmul.mubr.f32.vlgmr.msra.gmra.mrb[0].mxu0 %v2363_v9  ;;  %1814 = vmatprep.subr.mxu0 %v2303_v3  ;;  %v149_v34 = vsub.f32 %v2391_v23, %v148_v29  ;;  %v158_v37 = vand.u32 4294901760, %v2413_v31  ;;  %v168_v44 = vand.u32 4294901760, %v2431_v38  ;;  %v55_v49 = vsel %vm32_vm0, %v29_v43, 0 }
   0xe   :  { %1815 = vmatpush3.msra.mxu0 %v2360_v8  ;;  %1790 = vmatprep.mubr.msk.f32.mxu0 %vm2304_vm1, %v2303_v3  ;;  %v140_v33 = vand.u32 4294901760, %v139_v26  ;;  %v178_v51 = vand.u32 4294901760, %v2449_v45  ;;  %v2467_v52 = vsub.f32 %v52_v42, %v2451_v46  ;;  %v2469_v53 = vand.u32 4294901760, %v55_v49  ;;  %p2286_p3 = por %p2285_p2, %p2284_p1 }
   0xf   :  { %1843 = vmatprep.subr.mxu0 %v2303_v3  ;;  %1759 = vmatmul.mubr.f32.vlgmr.msra.gmra.mrb[0].mxu1 %v130_v30  ;;  %v150_v40 = vand.u32 4294901760, %v149_v34  ;;  %v159_v41 = vsub.f32 %v2413_v31, %v158_v37  ;;  %v169_v48 = vsub.f32 %v2431_v38, %v168_v44  ;;  %v58_v56 = vsel %vm32_vm0, %v30_v50, 0 }
  0x10   :  { %1761 = vmatprep.mubr.msk.f32.mxu1 %vm2304_vm1, %v2303_v3  ;;  %2171 = vmatpush3.msra.mxu1 %v221_v20  ;;  %v179_v55 = vsub.f32 %v2449_v45, %v178_v51  ;;  %v188_v57 = vand.u32 4294901760, %v2467_v52  ;;  %v2483_v58 = vsub.f32 %v55_v49, %v2469_v53  ;;  %v2485_v59 = vand.u32 4294901760, %v58_v56  ;;  %p2287_p4 = pnand %p2286_p3, %p2280_p0 }
  0x11   :  { %1791 = vmatmul.mubr.f32.gmra.mrb[2].mxu0 %v2367_v11  ;;  %v160_v47 = vand.u32 4294901760, %v159_v41  ;;  %v170_v54 = vand.u32 4294901760, %v169_v48  ;;  %v2305_v48 = vmov 0   ;;  %vm876_vm3 = vcmask 1040384  }
  0x12   :  { %1793 = vmatprep.mubr.msk.f32.mxu0 %vm2304_vm1, %v2303_v3  ;;  %v180_v60 = vand.u32 4294901760, %v179_v55  ;;  %v189_v61 = vsub.f32 %v2467_v52, %v188_v57  ;;  %v198_v62 = vand.u32 4294901760, %v2483_v58  ;;  %v207_v63 = vsub.f32 %v58_v56, %v2485_v59  ;;  %2277 = vset.pattern.permute.xlu0 %v2305_v48  ;;  %v1566_v55 = vld [vmem:[%s2819_s3 + $0x18] sm:$0xff] }
  0x13   :  { %1762 = vmatmul.mubr.f32.gmra.mrb[2].mxu1 %v140_v33  ;;  %2278 = vset.pattern.permute.xlu1 %v2305_v48 }
  0x14   :  { %1764 = vmatprep.mubr.msk.f32.mxu1 %vm2304_vm1, %v2303_v3  ;;  %v190_v0 = vand.u32 4294901760, %v189_v61  ;;  %v199_v1 = vsub.f32 %v2483_v58, %v198_v62  ;;  %v208_v2 = vand.u32 4294901760, %v207_v63 }
  0x15   :  { %1794 = vmatmul.mubr.f32.gmra.mrb[4].mxu0 %v2382_v17 }
  0x16   :  { %1796 = vmatprep.mubr.msk.f32.mxu0 %vm2304_vm1, %v2303_v3  ;;  %v200_v5 = vand.u32 4294901760, %v199_v1  ;;  %v209_v6 = vsub.f32 %v207_v63, %v208_v2 }
  0x17   :  { %1765 = vmatmul.mubr.f32.gmra.mrb[4].mxu1 %v150_v40 }
  0x18   :  { %1767 = vmatprep.mubr.msk.f32.mxu1 %vm2304_vm1, %v2303_v3  ;;  %v210_v7 = vand.u32 4294901760, %v209_v6 }
  0x19   :  { %1797 = vmatmul.mubr.f32.gmra.mrb[6].mxu0 %v2402_v27 }
  0x1a   :  { %1816 = vmatprep.mubr.msk.f32.mxu0 %vm2304_vm1, %v2303_v3 }
  0x1b   :  { %1768 = vmatmul.mubr.f32.gmra.mrb[6].mxu1 %v160_v47  ;;  %v1565_v47 = vld [vmem:[%s2819_s3 + $0x10] sm:$0xff] }
  0x1c   :  { %1770 = vmatprep.mubr.msk.f32.mxu1 %vm2304_vm1, %v2303_v3  ;;  %1579 = vperm.xlu1 %2278, %v1565_v47  }
  0x1d   :  { %1817 = vmatmul.mubr.f32.vlgmr.msra.gmra.mrb[0].mxu0 %v2371_v13 }
  0x1e   :  { %1844 = vmatpush3.msra.mxu0 %v2347_v4  ;;  %1819 = vmatprep.mubr.msk.f32.mxu0 %vm2304_vm1, %v2303_v3 }
  0x1f   :  { %1872 = vmatprep.subr.mxu0 %v2303_v3  ;;  %1771 = vmatmul.mubr.f32.gmra.mrb[8].mxu1 %v170_v54  ;;  %v1564_v54 = vld [vmem:[%s2819_s3 + $0x8] sm:$0xff] }
  0x20   :  { %1773 = vmatprep.mubr.msk.f32.mxu1 %vm2304_vm1, %v2303_v3  ;;  %1584 = vperm.xlu1 %2278, %v1566_v55  }
  0x21   :  { %1820 = vmatmul.mubr.f32.gmra.mrb[2].mxu0 %v2380_v16  ;;  %v865_v16 = vsel %vm863_vm2, %v859_v15, 0 }
  0x22   :  { %1822 = vmatprep.mubr.msk.f32.mxu0 %vm2304_vm1, %v2303_v3 }
  0x23   :  { %1774 = vmatmul.mubr.f32.gmra.mrb[10].mxu1 %v180_v60 }
  0x24   :  { %1776 = vmatprep.mubr.msk.f32.mxu1 %vm2304_vm1, %v2303_v3 }
  0x25   :  { %1823 = vmatmul.mubr.f32.gmra.mrb[4].mxu0 %v2391_v23 }
  0x26   :  { %1825 = vmatprep.mubr.msk.f32.mxu0 %vm2304_vm1, %v2303_v3 }
  0x27   :  { %1777 = vmatmul.mubr.f32.gmra.mrb[12].mxu1 %v190_v0  ;;  %v860_v0 = vld [vmem:[%s2818_s2 + $0x8] sm:$0xff] }
  0x28   :  { %1779 = vmatprep.mubr.msk.f32.mxu1 %vm2304_vm1, %v2303_v3 }
  0x29   :  { %1826 = vmatmul.mubr.f32.gmra.mrb[6].mxu0 %v2413_v31 }
  0x2a   :  { %1828 = vmatprep.mubr.msk.f32.mxu0 %vm2304_vm1, %v2303_v3 }
  0x2b   :  { %1780 = vmatmul.mubr.f32.gmra.mrb[14].mxu1 %v200_v5 }
  0x2c   :  { %1782 = vmatprep.mubr.msk.f32.mxu1 %vm2304_vm1, %v2303_v3 }
  0x2d   :  { %1829 = vmatmul.mubr.f32.gmra.mrb[8].mxu0 %v2431_v38 }
  0x2e   :  { %1831 = vmatprep.mubr.msk.f32.mxu0 %vm2304_vm1, %v2303_v3 }
  0x2f   :  { %1783 = vmatmul.mubr.f32.gmra.mrb[16].mxu1 %v210_v7 }
  0x30   :  { %1799 = vmatprep.mubr.msk.f32.mxu1 %vm2304_vm1, %v2303_v3 }
  0x31   :  { %1832 = vmatmul.mubr.f32.gmra.mrb[10].mxu0 %v2449_v45 }
  0x32   :  { %1834 = vmatprep.mubr.msk.f32.mxu0 %vm2304_vm1, %v2303_v3 }
  0x33   :  { %1800 = vmatmul.mubr.f32.vlgmr.msra.gmra.mrb[8].mxu1 %v2415_v32 }
  0x34   :  { %1802 = vmatprep.mubr.msk.f32.mxu1 %vm2304_vm1, %v2303_v3 }
  0x35   :  { %1835 = vmatmul.mubr.f32.gmra.mrb[12].mxu0 %v2467_v52 }
  0x36   :  { %1837 = vmatprep.mubr.msk.f32.mxu0 %vm2304_vm1, %v2303_v3 }
  0x37   :  { %1803 = vmatmul.mubr.f32.gmra.mrb[10].mxu1 %v2433_v39 }
  0x38   :  { %1805 = vmatprep.mubr.msk.f32.mxu1 %vm2304_vm1, %v2303_v3 }
  0x39   :  { %1838 = vmatmul.mubr.f32.gmra.mrb[14].mxu0 %v2483_v58 }
  0x3a   :  { %1840 = vmatprep.mubr.msk.f32.mxu0 %vm2304_vm1, %v2303_v3 }
  0x3b   :  { %1806 = vmatmul.mubr.f32.gmra.mrb[12].mxu1 %v2451_v46 }
  0x3c   :  { %1808 = vmatprep.mubr.msk.f32.mxu1 %vm2304_vm1, %v2303_v3 }
  0x3d   :  { %1841 = vmatmul.mubr.f32.gmra.mrb[16].mxu0 %v207_v63 }
  0x3e   :  { %1845 = vmatprep.mubr.msk.f32.mxu0 %vm2304_vm1, %v2303_v3 }
  0x3f   :  { %1809 = vmatmul.mubr.f32.gmra.mrb[14].mxu1 %v2469_v53 }
  0x40   :  { %1811 = vmatprep.mubr.msk.f32.mxu1 %vm2304_vm1, %v2303_v3 }
  0x41   :  { %1846 = vmatmul.mubr.f32.vlgmr.msra.gmra.mrb[0].mxu0 %v128_v19 }
  0x42   :  { %1873 = vmatpush3.msra.mxu0 %v219_v10  ;;  %1848 = vmatprep.mubr.msk.f32.mxu0 %vm2304_vm1, %v2303_v3 }
  0x43   :  { %1901 = vmatprep.subr.mxu0 %v2303_v3  ;;  %1812 = vmatmul.mubr.f32.gmra.mrb[16].mxu1 %v2485_v59 }
  0x45   :  { %1849 = vmatmul.mubr.f32.gmra.mrb[2].mxu0 %v138_v22 }
  0x46   :  { %1851 = vmatprep.mubr.msk.f32.mxu0 %vm2304_vm1, %v2303_v3 }
  0x49   :  { %1852 = vmatmul.mubr.f32.gmra.mrb[4].mxu0 %v148_v29 }
  0x4a   :  { %1854 = vmatprep.mubr.msk.f32.mxu0 %vm2304_vm1, %v2303_v3 }
  0x4d   :  { %1855 = vmatmul.mubr.f32.gmra.mrb[6].mxu0 %v158_v37 }
  0x4e   :  { %1857 = vmatprep.mubr.msk.f32.mxu0 %vm2304_vm1, %v2303_v3 }
  0x51   :  { %1858 = vmatmul.mubr.f32.gmra.mrb[8].mxu0 %v168_v44 }
  0x52   :  { %1860 = vmatprep.mubr.msk.f32.mxu0 %vm2304_vm1, %v2303_v3 }
  0x55   :  { %1861 = vmatmul.mubr.f32.gmra.mrb[10].mxu0 %v178_v51 }
  0x56   :  { %1863 = vmatprep.mubr.msk.f32.mxu0 %vm2304_vm1, %v2303_v3 }
  0x59   :  { %1864 = vmatmul.mubr.f32.gmra.mrb[12].mxu0 %v188_v57 }
  0x5a   :  { %1866 = vmatprep.mubr.msk.f32.mxu0 %vm2304_vm1, %v2303_v3 }
  0x5d   :  { %1867 = vmatmul.mubr.f32.gmra.mrb[14].mxu0 %v198_v62 }
  0x5e   :  { %1869 = vmatprep.mubr.msk.f32.mxu0 %vm2304_vm1, %v2303_v3 }
  0x61   :  { %1870 = vmatmul.mubr.f32.gmra.mrb[16].mxu0 %v208_v2 }
  0x62   :  { %1874 = vmatprep.mubr.msk.f32.mxu0 %vm2304_vm1, %v2303_v3 }
  0x65   :  { %1875 = vmatmul.mubr.f32.vlgmr.msra.gmra.mrb[0].mxu0 %v2363_v9 }
  0x66   :  { %1902 = vmatpush3.msra.mxu0 %v2347_v4  ;;  %1877 = vmatprep.mubr.msk.f32.mxu0 %vm2304_vm1, %v2303_v3 }
  0x69   :  { %1878 = vmatmul.mubr.f32.gmra.mrb[2].mxu0 %v2367_v11 }
  0x6a   :  { %1880 = vmatprep.mubr.msk.f32.mxu0 %vm2304_vm1, %v2303_v3 }
  0x6d   :  { %1881 = vmatmul.mubr.f32.gmra.mrb[4].mxu0 %v2382_v17 }
  0x6e   :  { %1883 = vmatprep.mubr.msk.f32.mxu0 %vm2304_vm1, %v2303_v3 }
  0x71   :  { %1884 = vmatmul.mubr.f32.gmra.mrb[6].mxu0 %v2402_v27 }
  0x72   :  { %1886 = vmatprep.mubr.msk.f32.mxu0 %vm2304_vm1, %v2303_v3 }
  0x75   :  { %1887 = vmatmul.mubr.f32.gmra.mrb[8].mxu0 %v2415_v32 }
  0x76   :  { %1889 = vmatprep.mubr.msk.f32.mxu0 %vm2304_vm1, %v2303_v3 }
  0x79   :  { %1890 = vmatmul.mubr.f32.gmra.mrb[10].mxu0 %v2433_v39 }
  0x7a   :  { %1892 = vmatprep.mubr.msk.f32.mxu0 %vm2304_vm1, %v2303_v3 }
  0x7d   :  { %1893 = vmatmul.mubr.f32.gmra.mrb[12].mxu0 %v2451_v46 }
  0x7e   :  { %1895 = vmatprep.mubr.msk.f32.mxu0 %vm2304_vm1, %v2303_v3 }
  0x81   :  { %1896 = vmatmul.mubr.f32.gmra.mrb[14].mxu0 %v2469_v53 }
  0x82   :  { %1898 = vmatprep.mubr.msk.f32.mxu0 %vm2304_vm1, %v2303_v3 }
  0x85   :  { %1899 = vmatmul.mubr.f32.gmra.mrb[16].mxu0 %v2485_v59 }
  0x86   :  { %1903 = vmatprep.mubr.msk.f32.mxu0 %vm2304_vm1, %v2303_v3 }
  0x89   :  { %1904 = vmatmul.mubr.f32.vlgmr.msra.gmra.mrb[0].mxu0 %v2363_v9 }
  0x8a   :  { %1906 = vmatprep.mubr.msk.f32.mxu0 %vm2304_vm1, %v2303_v3 }
  0x8d   :  { %1907 = vmatmul.mubr.f32.gmra.mrb[2].mxu0 %v2367_v11 }
  0x8e   :  { %1909 = vmatprep.mubr.msk.f32.mxu0 %vm2304_vm1, %v2303_v3 }
  0x91   :  { %1910 = vmatmul.mubr.f32.gmra.mrb[4].mxu0 %v2382_v17  ;;  %v2632_v17 = vand.u32 4294901760, %v865_v16 }
  0x92   :  { %1912 = vmatprep.mubr.msk.f32.mxu0 %vm2304_vm1, %v2303_v3 }
  0x95   :  { %1913 = vmatmul.mubr.f32.gmra.mrb[6].mxu0 %v2402_v27 }
  0x96   :  { %1915 = vmatprep.mubr.msk.f32.mxu0 %vm2304_vm1, %v2303_v3 }
  0x99   :  { %1916 = vmatmul.mubr.f32.gmra.mrb[8].mxu0 %v2415_v32 }
  0x9a   :  { %1918 = vmatprep.mubr.msk.f32.mxu0 %vm2304_vm1, %v2303_v3 }
  0x9d   :  { %1919 = vmatmul.mubr.f32.gmra.mrb[10].mxu0 %v2433_v39 }
  0x9e   :  { %1921 = vmatprep.mubr.msk.f32.mxu0 %vm2304_vm1, %v2303_v3 }
  0xa1   :  { %1922 = vmatmul.mubr.f32.gmra.mrb[12].mxu0 %v2451_v46  ;;  %v1563_v46 = vld [vmem:[%s2819_s3] sm:$0xff] }
  0xa2   :  { %1924 = vmatprep.mubr.msk.f32.mxu0 %vm2304_vm1, %v2303_v3  ;;  %1569 = vperm.xlu0 %2277, %v1563_v46  }
  0xa5   :  { %1925 = vmatmul.mubr.f32.gmra.mrb[14].mxu0 %v2469_v53 }
  0xa6   :  { %1927 = vmatprep.mubr.msk.f32.mxu0 %vm2304_vm1, %v2303_v3  ;;  %v2635_v3 = vsub.f32 %v865_v16, %v2632_v17  ;;  %1574 = vperm.xlu0 %2277, %v1564_v54   ;;  %v862_v16 = vld [vmem:[%s2818_s2 + $0x18] sm:$0xff] }
  0xa8   :  { %v956_v18 = vand.u32 4294901760, %v2635_v3 }
  0xa9   :  { %1928 = vmatmul.mubr.f32.gmra.mrb[16].mxu0 %v2485_v59 }
  0xaa   :  { %v957_v19 = vsub.f32 %v2635_v3, %v956_v18 }
  0xac   :  { %v958_v20 = vand.u32 4294901760, %v957_v19 }
  0xae   :  { %1948 = vmatprep.mubr.f32.mxu1 %v958_v20 }
  0xe2   :  { %v132_v4 = vpop.f32.mrb[0].mxu1 }
  0xe3   :  { %v1760_v8 = vpop.f32.mrb[1].mxu1 }
  0xe6   :  { %v142_v9 = vpop.f32.mrb[2].mxu1 }
  0xe7   :  { %v1763_v10 = vpop.f32.mrb[3].mxu1 }
  0xe8   :  { %v861_v10 = vld [vmem:[%s2818_s2 + $0x10] sm:$0xff] }
  0xea   :  { %v152_v11 = vpop.f32.mrb[4].mxu1 }
  0xeb   :  { %v1766_v12 = vpop.f32.mrb[5].mxu1 }
  0xee   :  { %v162_v13 = vpop.f32.mrb[6].mxu1 }
  0xef   :  { %v1769_v14 = vpop.f32.mrb[7].mxu1 }
 0x106   :  { %v312_v21 = vpop.f32.mrb[8].mxu1 }
 0x107   :  { %v1801_v22 = vpop.f32.mrb[9].mxu1 }
 0x10a   :  { %v2641_v23 = vpop.f32.mrb[10].mxu1 }
 0x10b   :  { %v1804_v24 = vpop.f32.mrb[11].mxu1 }
 0x10e   :  { %v2643_v25 = vpop.f32.mrb[12].mxu1 }
 0x10f   :  { %v1807_v26 = vpop.f32.mrb[13].mxu1 }
 0x112   :  { %v2645_v27 = vpop.f32.mrb[14].mxu1 }
 0x113   :  { %v1810_v28 = vpop.f32.mrb[15].mxu1 }
 0x116   :  { %v2647_v29 = vpop.f32.mrb[16].mxu1 }
 0x117   :  { %v1813_v30 = vpop.f32.mrb[17].mxu1 }
 0x15c   :  { %v798_v31 = vpop.f32.mrb[0].mxu0 }
 0x15d   :  { %v2172_v32 = vadd.f32 %v798_v31, %v132_v4  ;;  %v1905_v33 = vpop.f32.mrb[1].mxu0 }
 0x15f   :  { %v850_v34 = vmax.f32 %v2172_v32, 0.0  ;;  %v874_v32 = vsel %vm863_vm2, %v862_v16, 0 }
 0x160   :  { %v804_v35 = vpop.f32.mrb[2].mxu0 }
 0x161   :  { %v881_v36 = vand.u32 4294901760, %v850_v34  ;;  %v2173_v37 = vadd.f32 %v804_v35, %v142_v9  ;;  %v1908_v38 = vpop.f32.mrb[3].mxu0 }
 0x163   :  { %v996_v39 = vsub.f32 %v850_v34, %v881_v36  ;;  %v851_v40 = vmax.f32 %v2173_v37, 0.0 }
 0x164   :  { %v810_v41 = vpop.f32.mrb[4].mxu0 }
 0x165   :  { %v997_v42 = vand.u32 4294901760, %v996_v39  ;;  %v884_v43 = vand.u32 4294901760, %v851_v40  ;;  %v2174_v44 = vadd.f32 %v810_v41, %v152_v11  ;;  %v1911_v45 = vpop.f32.mrb[5].mxu0  ;;  %v868_v11 = vsel %vm863_vm2, %v860_v0, 0 }
 0x166   :  { %v2689_v31 = vand.u32 4294901760, %v868_v11  ;;  %v2700_v45 = vand.u32 4294901760, %v874_v32 }
 0x167   :  { %v2655_v49 = vpack.c.bf16 %v884_v43, %v881_v36  ;;  %v1003_v50 = vsub.f32 %v851_v40, %v884_v43  ;;  %v852_v51 = vmax.f32 %v2174_v44, 0.0  ;;  %v998_v53 = vsub.f32 %v996_v39, %v997_v42 }
 0x168   :  { %v816_v52 = vpop.f32.mrb[6].mxu0  ;;  %v2698_v44 = vsub.f32 %v868_v11, %v2689_v31 }
 0x169   :  { %v1004_v56 = vand.u32 4294901760, %v1003_v50  ;;  %v887_v57 = vand.u32 4294901760, %v852_v51  ;;  %v2175_v58 = vadd.f32 %v816_v52, %v162_v13  ;;  %v1914_v59 = vpop.f32.mrb[7].mxu0  ;;  %2075 = vmatprep.subr.bf16.mxu1 %v2655_v49  ;;  %v2665_v60 = vpack.c.bf16 %v1003_v50, %v996_v39 }
 0x16a   :  { %2077 = vmatpush3.bf16.msra.mxu1 %v2655_v49  ;;  %v999_v5 = vand.u32 4294901760, %v998_v53  ;;  %v2714_v59 = vsub.f32 %v874_v32, %v2700_v45 }
 0x16b   :  { %v1010_v61 = vsub.f32 %v852_v51, %v887_v57  ;;  %v853_v62 = vmax.f32 %v2175_v58, 0.0  ;;  %v1005_v63 = vsub.f32 %v1003_v50, %v1004_v56  ;;  %v2670_v1 = vpack.c.bf16 %v1004_v56, %v997_v42 }
 0x16c   :  { %v822_v2 = vpop.f32.mrb[8].mxu0  ;;  %v966_v58 = vand.u32 4294901760, %v2698_v44  ;;  %v986_v11 = vand.u32 4294901760, %v2714_v59 }
 0x16d   :  { %v1011_v6 = vand.u32 4294901760, %v1010_v61  ;;  %v890_v7 = vand.u32 4294901760, %v853_v62  ;;  %v2176_v4 = vadd.f32 %v822_v2, %v312_v21  ;;  %v1917_v8 = vpop.f32.mrb[9].mxu0  ;;  %v1006_v9 = vand.u32 4294901760, %v1005_v63 }
 0x16e   :  { %v871_v21 = vsel %vm863_vm2, %v861_v10, 0  ;;  %v967_v10 = vsub.f32 %v2698_v44, %v966_v58 }
 0x16f   :  { %v2676_v12 = vpack.c.bf16 %v890_v7, %v887_v57  ;;  %v1017_v13 = vsub.f32 %v853_v62, %v890_v7  ;;  %v854_v14 = vmax.f32 %v2176_v4, 0.0  ;;  %v2678_v15 = vpack.c.bf16 %v1006_v9, %v999_v5 }
 0x170   :  { %v828_v19 = vpop.f32.mrb[10].mxu0  ;;  %v1012_v20 = vsub.f32 %v1010_v61, %v1011_v6  ;;  %v2694_v39 = vand.u32 4294901760, %v871_v21 }
 0x171   :  { %v1018_v22 = vand.u32 4294901760, %v1017_v13  ;;  %v893_v24 = vand.u32 4294901760, %v854_v14  ;;  %v2177_v26 = vadd.f32 %v828_v19, %v2641_v23  ;;  %v1920_v28 = vpop.f32.mrb[11].mxu0  ;;  %2079 = vmatprep.subr.bf16.mxu1 %v2676_v12  ;;  %v2686_v30 = vpack.c.bf16 %v1017_v13, %v1010_v61 }
 0x172   :  { %2081 = vmatpush3.bf16.msra.mxu1 %v2676_v12  ;;  %v1013_v38 = vand.u32 4294901760, %v1012_v20  ;;  %v2705_v53 = vsub.f32 %v871_v21, %v2694_v39  ;;  %v968_v28 = vand.u32 4294901760, %v967_v10 }
 0x173   :  { %v1024_v33 = vsub.f32 %v854_v14, %v893_v24  ;;  %v855_v34 = vmax.f32 %v2177_v26, 0.0  ;;  %v1019_v35 = vsub.f32 %v1017_v13, %v1018_v22  ;;  %v2692_v36 = vpack.c.bf16 %v1018_v22, %v1011_v6 }
 0x174   :  { %v834_v37 = vpop.f32.mrb[12].mxu0 }
 0x175   :  { %v1025_v23 = vand.u32 4294901760, %v1024_v33  ;;  %v896_v40 = vand.u32 4294901760, %v855_v34  ;;  %v2178_v41 = vadd.f32 %v834_v37, %v2643_v25  ;;  %v1923_v42 = vpop.f32.mrb[13].mxu0  ;;  %v1020_v43 = vand.u32 4294901760, %v1019_v35 }
 0x177   :  { %v2702_v46 = vpack.c.bf16 %v896_v40, %v893_v24  ;;  %v1031_v47 = vsub.f32 %v855_v34, %v896_v40  ;;  %v856_v48 = vmax.f32 %v2178_v41, 0.0  ;;  %v2094_v50 = vpack.c.bf16 %v1020_v43, %v1013_v38 }
 0x178   :  { %v840_v51 = vpop.f32.mrb[14].mxu0  ;;  %v1026_v52 = vsub.f32 %v1024_v33, %v1025_v23 }
 0x179   :  { %v1032_v54 = vand.u32 4294901760, %v1031_v47  ;;  %v899_v55 = vand.u32 4294901760, %v856_v48  ;;  %v2179_v25 = vadd.f32 %v840_v51, %v2645_v27  ;;  %v1926_v56 = vpop.f32.mrb[15].mxu0  ;;  %2083 = vmatprep.subr.bf16.mxu1 %v2702_v46  ;;  %v2709_v57 = vpack.c.bf16 %v1031_v47, %v1024_v33 }
 0x17a   :  { %2085 = vmatpush3.bf16.msra.mxu1 %v2702_v46  ;;  %v1027_v5 = vand.u32 4294901760, %v1026_v52  ;;  %v976_v27 = vand.u32 4294901760, %v2705_v53  ;;  %v987_v33 = vsub.f32 %v2714_v59, %v986_v11 }
 0x17b   :  { %v1038_v61 = vsub.f32 %v856_v48, %v899_v55  ;;  %v857_v62 = vmax.f32 %v2179_v25, 0.0  ;;  %v1033_v63 = vsub.f32 %v1031_v47, %v1032_v54  ;;  %v2716_v0 = vpack.c.bf16 %v1032_v54, %v1025_v23 }
 0x17c   :  { %v846_v2 = vpop.f32.mrb[16].mxu0  ;;  %v977_v20 = vsub.f32 %v2705_v53, %v976_v27  ;;  %v988_v41 = vand.u32 4294901760, %v987_v33 }
 0x17d   :  { %v1039_v6 = vand.u32 4294901760, %v1038_v61  ;;  %v902_v7 = vand.u32 4294901760, %v857_v62  ;;  %v2180_v4 = vadd.f32 %v846_v2, %v2647_v29  ;;  %v1929_v8 = vpop.f32.mrb[17].mxu0  ;;  %v1034_v9 = vand.u32 4294901760, %v1033_v63 }
 0x17e   :  { %v978_v35 = vand.u32 4294901760, %v977_v20 }
 0x17f   :  { %v2724_v13 = vpack.c.bf16 %v902_v7, %v899_v55  ;;  %v1045_v14 = vsub.f32 %v857_v62, %v902_v7  ;;  %v858_v16 = vmax.f32 %v2180_v4, 0.0  ;;  %v2098_v19 = vpack.c.bf16 %v1034_v9, %v1027_v5 }
 0x180   :  { %v1040_v22 = vsub.f32 %v1038_v61, %v1039_v6 }
 0x181   :  { %v1046_v21 = vand.u32 4294901760, %v1045_v14  ;;  %v878_v29 = vsel %vm876_vm3, %v858_v16, 0  ;;  %2087 = vmatprep.subr.bf16.mxu1 %v2724_v13  ;;  %v2118_v24 = vpack.c.bf16 %v1045_v14, %v1038_v61 }
 0x182   :  { %v2730_v26 = vand.u32 4294901760, %v878_v29  ;;  %2089 = vmatpush3.bf16.msra.mxu1 %v2724_v13  ;;  %v1041_v37 = vand.u32 4294901760, %v1040_v22 }
 0x183   :  { %v1047_v32 = vsub.f32 %v1045_v14, %v1046_v21  ;;  %v2736_v34 = vpack.c.bf16 %v1046_v21, %v1039_v6 }
 0x184   :  { %1946 = vmatprep.subr.mxu1 %v2730_v26  ;;  %v1052_v23 = vsub.f32 %v878_v29, %v2730_v26 }
 0x185   :  { %v1048_v38 = vand.u32 4294901760, %v1047_v32 }
 0x186   :  { %1947 = vmatpush3.msra.mxu1 %v2730_v26  ;;  %v1053_v42 = vand.u32 4294901760, %v1052_v23 }
 0x187   :  { %2091 = vmatprep.subr.bf16.mxu1 %v2678_v15  ;;  %1949 = vmatmul.mubr.f32.vlgmr.msra.gmra.mrb[18].mxu1 %v968_v28  ;;  %v2102_v40 = vpack.c.bf16 %v1048_v38, %v1041_v37 }
 0x188   :  { %2093 = vmatpush3.bf16.msra.mxu1 %v2678_v15  ;;  %1951 = vmatprep.mubr.f32.mxu1 %v978_v35  ;;  %v1054_v43 = vsub.f32 %v1052_v23, %v1053_v42 }
 0x189   :  { %2095 = vmatprep.subr.bf16.mxu1 %v2094_v50 }
 0x18a   :  { %v1055_v47 = vand.u32 4294901760, %v1054_v43 }
 0x18b   :  { %1952 = vmatmul.mubr.f32.gmra.mrb[20].mxu1 %v988_v41 }
 0x18c   :  { %2097 = vmatpush3.bf16.msra.mxu1 %v2094_v50  ;;  %1972 = vmatprep.mubr.f32.mxu1 %v2632_v17 }
 0x18d   :  { %2099 = vmatprep.subr.bf16.mxu1 %v2098_v19 }
 0x190   :  { %2101 = vmatpush3.bf16.msra.mxu1 %v2098_v19 }
 0x191   :  { %2103 = vmatprep.subr.bf16.mxu1 %v2102_v40 }
 0x194   :  { %2105 = vmatpush3.bf16.msra.mxu1 %v2102_v40 }
 0x195   :  { %1970 = vmatprep.subr.mxu1 %v1055_v47 }
 0x198   :  { %1971 = vmatpush3.msra.mxu1 %v1055_v47 }
 0x199   :  { %2107 = vmatprep.subr.bf16.mxu1 %v2665_v60  ;;  %1973 = vmatmul.mubr.f32.vlgmr.msra.gmra.mrb[18].mxu1 %v2689_v31 }
 0x19a   :  { %2109 = vmatpush3.bf16.msra.mxu1 %v2665_v60  ;;  %1975 = vmatprep.mubr.f32.mxu1 %v2694_v39 }
 0x19b   :  { %2111 = vmatprep.subr.bf16.mxu1 %v2686_v30 }
 0x19d   :  { %1976 = vmatmul.mubr.f32.gmra.mrb[20].mxu1 %v2700_v45 }
 0x19e   :  { %2113 = vmatpush3.bf16.msra.mxu1 %v2686_v30  ;;  %1996 = vmatprep.mubr.f32.mxu1 %v2635_v3  ;;  %v1570_v3 = vpop.permute.xlu0 %1569 }
 0x19f   :  { %2115 = vmatprep.subr.bf16.mxu1 %v2709_v57 }
 0x1a2   :  { %2117 = vmatpush3.bf16.msra.mxu1 %v2709_v57  ;;  %v1601_v57 = vstv %s2820_s4 }
 0x1a3   :  { %2119 = vmatprep.subr.bf16.mxu1 %v2118_v24 }
 0x1a6   :  { %2121 = vmatpush3.bf16.msra.mxu1 %v2118_v24 }
 0x1a7   :  { %1994 = vmatprep.subr.mxu1 %v1052_v23 }
 0x1aa   :  { %1995 = vmatpush3.msra.mxu1 %v1052_v23 }
 0x1ab   :  { %2123 = vmatprep.subr.bf16.mxu1 %v2655_v49  ;;  %1997 = vmatmul.mubr.f32.vlgmr.msra.gmra.mrb[18].mxu1 %v2698_v44 }
 0x1ac   :  { %2125 = vmatpush3.bf16.msra.mxu1 %v2655_v49  ;;  %1999 = vmatprep.mubr.f32.mxu1 %v2705_v53 }
 0x1ad   :  { %2127 = vmatprep.subr.bf16.mxu1 %v2676_v12 }
 0x1af   :  { %2000 = vmatmul.mubr.f32.gmra.mrb[20].mxu1 %v2714_v59 }
 0x1b0   :  { %2129 = vmatpush3.bf16.msra.mxu1 %v2676_v12  ;;  %2020 = vmatprep.mubr.f32.mxu1 %v956_v18  ;;  %v1575_v18 = vpop.permute.xlu0 %1574 }
 0x1b1   :  { %2131 = vmatprep.subr.bf16.mxu1 %v2702_v46 }
 0x1b4   :  { %2133 = vmatpush3.bf16.msra.mxu1 %v2702_v46 }
 0x1b5   :  { %2135 = vmatprep.subr.bf16.mxu1 %v2724_v13 }
 0x1b8   :  { %2137 = vmatpush3.bf16.msra.mxu1 %v2724_v13 }
 0x1b9   :  { %2018 = vmatprep.subr.mxu1 %v2730_v26 }
 0x1bc   :  { %2019 = vmatpush3.msra.mxu1 %v2730_v26 }
 0x1bd   :  { %2139 = vmatprep.subr.bf16.mxu1 %v2670_v1  ;;  %2021 = vmatmul.mubr.f32.vlgmr.msra.gmra.mrb[18].mxu1 %v966_v58 }
 0x1be   :  { %2141 = vmatpush3.bf16.msra.mxu1 %v2670_v1  ;;  %2023 = vmatprep.mubr.f32.mxu1 %v976_v27  ;;  %v1580_v1 = vpop.permute.xlu1 %1579 }
 0x1bf   :  { %2143 = vmatprep.subr.bf16.mxu1 %v2692_v36 }
 0x1c1   :  { %2024 = vmatmul.mubr.f32.gmra.mrb[20].mxu1 %v986_v11 }
 0x1c2   :  { %2145 = vmatpush3.bf16.msra.mxu1 %v2692_v36  ;;  %2044 = vmatprep.mubr.f32.mxu1 %v2632_v17  ;;  %v1585_v51 = vpop.permute.xlu1 %1584 }
 0x1c3   :  { %2147 = vmatprep.subr.bf16.mxu1 %v2716_v0 }
 0x1c6   :  { %2149 = vmatpush3.bf16.msra.mxu1 %v2716_v0 }
 0x1c7   :  { %2151 = vmatprep.subr.bf16.mxu1 %v2736_v34 }
 0x1ca   :  { %2153 = vmatpush3.bf16.msra.mxu1 %v2736_v34 }
 0x1cb   :  { %2042 = vmatprep.subr.mxu1 %v1053_v42 }
 0x1ce   :  { %2043 = vmatpush3.msra.mxu1 %v1053_v42 }
 0x1cf   :  { %2155 = vmatprep.subr.bf16.mxu1 %v2655_v49  ;;  %2045 = vmatmul.mubr.f32.vlgmr.msra.gmra.mrb[18].mxu1 %v2689_v31 }
 0x1d0   :  { %2157 = vmatpush3.bf16.msra.mxu1 %v2655_v49  ;;  %2047 = vmatprep.mubr.f32.mxu1 %v2694_v39 }
 0x1d1   :  { %2159 = vmatprep.subr.bf16.mxu1 %v2676_v12 }
 0x1d3   :  { %2048 = vmatmul.mubr.f32.gmra.mrb[20].mxu1 %v2700_v45 }
 0x1d4   :  { %2161 = vmatpush3.bf16.msra.mxu1 %v2676_v12  ;;  %2068 = vmatprep.mubr.f32.mxu1 %v2632_v17 }
 0x1d5   :  { %2163 = vmatprep.subr.bf16.mxu1 %v2702_v46 }
 0x1d8   :  { %2165 = vmatpush3.bf16.msra.mxu1 %v2702_v46 }
 0x1d9   :  { %2167 = vmatprep.subr.bf16.mxu1 %v2724_v13 }
 0x1dc   :  { %2169 = vmatpush3.bf16.msra.mxu1 %v2724_v13 }
 0x1dd   :  { %2066 = vmatprep.subr.mxu1 %v2730_v26 }
 0x1e0   :  { %2067 = vmatpush3.msra.mxu1 %v2730_v26 }
 0x1e1   :  { %2069 = vmatmul.mubr.f32.vlgmr.msra.gmra.mrb[18].mxu1 %v2689_v31 }
 0x1e2   :  { %2071 = vmatprep.mubr.f32.mxu1 %v2694_v39 }
 0x1e5   :  { %2072 = vmatmul.mubr.f32.gmra.mrb[20].mxu1 %v2700_v45 }
 0x2b4   :  { %v2070_v17 = vpop.f32.mrb[18].mxu1 }
 0x2b5   :  { %v1560_v49 = vmax.f32 %v2070_v17, 0.0  ;;  %v1537_v60 = vpop.f32.mrb[19].mxu1 }
 0x2b6   :  { %v1559_v12 = vmax.f32 %v1537_v60, 0.0 }
 0x2b7   :  { %v1588_v15 = vmul.f32 %v1575_v18, %v1560_v49 }
 0x2b8   :  { %v1587_v30 = vmul.f32 %v1570_v3, %v1559_v12  ;;  %v2073_v36 = vpop.f32.mrb[20].mxu1 }
 0x2b9   :  { %v1549_v44 = vpop.f32.mrb[21].mxu1  ;;  %v1562_v48 = vmax.f32 %v2073_v36, 0.0 }
 0x2ba   :  { %v1591_v46 = vadd.f32 %v1588_v15, %v1587_v30  ;;  %v1561_v50 = vmax.f32 %v1549_v44, 0.0 }
 0x2bb   :  { %v1590_v39 = vmul.f32 %v1585_v51, %v1562_v48 }
 0x2bc   :  { %v1589_v31 = vmul.f32 %v1580_v1, %v1561_v50 }
 0x2be   :  { %v1592_v52 = vadd.f32 %v1591_v46, %v1589_v31 }
 0x2c0   :  { %v1593_v53 = vadd.f32 %v1592_v52, %v1590_v39 }
 0x2c2   :  { %v1594_v45 = vrot.slane %v1593_v53, 4 }
 0x2c4   :  { %v1595_v54 = vadd.f32 %v1594_v45, %v1593_v53 }
 0x2c6   :  { %v1596_v55 = vrot.slane %v1595_v54, 2 }
 0x2c8   :  { %v1597_v25 = vadd.f32 %v1596_v55, %v1595_v54 }
 0x2ca   :  { %v1598_v56 = vrot.slane %v1597_v25, 1 }
 0x2cc   :  { %v1599_v58 = vadd.f32 %v1598_v56, %v1597_v25 }
 0x2ce   :  { %v1602_v59 = vadd.f32 %v1601_v57, %v1599_v58 }
 0x2d0   :  { %1603 = vst [vmem:[#allocation3] sm:$0x1] %v1602_v59 }
 0x2d1   :  { %2290 = shalt.err (!%p2287_p4)
}
 0x2d2   :  { %s2291_s7 = scalar_lea.hbm %s2821_s5, 16 }
 0x2d3   :  { %p2292_p5 = scmp.ne.s32.totalorder %s2821_s5, %s2291_s7  ;;  %p2295_p6 = scmp.lt.u32.totalorder %s2291_s7, %s2821_s5 }
 0x2d5   :  { %p2297_p7 = pnand %p2295_p6, %p2292_p5 }
 0x2d7   :  { %2300 = shalt.err (!%p2297_p7)
}
 0x2d8   :  { %1613 = dma.vmem_to_hbm [thread:$0]  %s1611_s27, 16, %s2821_s5, [#allocation4]  }
 0x2d9   :  { %2301 = dma.done.wait [#allocation4], 16  }
 0x2da   :  { %2302 = vsyncadd [#allocation4], 4294967280 }
 0x2db   :  { %1617 = vsyncpa [#allocation4], 1 }

</bundles_post_ra>
